<compile_context>
chip_gen: v5e
topology: v5e:2x2
jax: 0.10.0
libtpu: 0.0.40
codegen_flags: <defaults>
</compile_context>

<pallas_src>
import math

import jax
import jax.numpy as jnp
from jax.experimental import pallas as pl
from jax.experimental.pallas import tpu as pltpu


_ACTIVATIONS = {
    "relu": lambda h: jnp.maximum(h, 0.0),
    # exact (erf) GELU, matching torch.nn.GELU(approximate='none')
    "gelu": lambda h: 0.5 * h * (1.0 + jax.lax.erf(h * (1.0 / math.sqrt(2.0)))),
    "tanh": jnp.tanh,
    "silu": lambda h: h * jax.nn.sigmoid(h),
}


def _round_up(v, m):
    return ((v + m - 1) // m) * m


def _pad2d(a, rows, cols):
    pr, pc = rows - a.shape[0], cols - a.shape[1]
    if pr or pc:
        a = jnp.pad(a, ((0, pr), (0, pc)))
    return a


def _make_ffn_kernel(num_linears, activation_fct):
    act = _ACTIVATIONS[activation_fct]

    def kernel(*refs):
        # refs = (x_tile, w_0..w_{n-1}, b_0..b_{n-1}, out_tile)
        x_ref = refs[0]
        w_refs = refs[1:1 + num_linears]
        b_refs = refs[1 + num_linears:1 + 2 * num_linears]
        o_ref = refs[-1]

        h = x_ref[...]
        for i in range(num_linears):
            w = w_refs[i][...]
            # MXU consumes operands in the parameter dtype; f32 accumulation.
            h = jnp.dot(h.astype(w.dtype), w,
                        preferred_element_type=jnp.float32)
            h = h + b_refs[i][...].astype(jnp.float32)
            if i < num_linears - 1:
                h = act(h)  # tanh/erf/sigmoid run on the EUP slot (cheap)
            # Dropout(p=0.0) -> identity.
            # TODO(synk): training-mode dropout with p > 0 (RNG mask) not implemented.
        o_ref[...] = h.astype(o_ref.dtype)

    return kernel


def feed_forward_general(x, weights, biases, activation_fct="tanh", tile_b=512):
    """Pallas-fused forward pass of FeedForwardGeneral (eval / dropout=0.0).

    weights[i] is stored pre-transposed as (in_features, out_features) so the
    kernel computes h @ W (== x @ W.T in PyTorch).  biases[i] is (1, out).
    """
    num_linears = len(weights)
    batch, in_dim = x.shape
    out_dim = weights[-1].shape[1]

    # ---- lane-dense padding: every feature width -> multiple of 128 ----
    dims = [in_dim] + [w.shape[1] for w in weights]
    pdims = [_round_up(d, 128) for d in dims]

    # ---- batch tiling: multiple of 8 sublanes, capped by (padded) batch ----
    tile_b = max(8, min(_round_up(tile_b, 8), _round_up(batch, 8)))
    batch_p = _round_up(batch, tile_b)
    grid = (pl.cdiv(batch_p, tile_b),)

    x_p = _pad2d(x, batch_p, pdims[0])
    w_p = [_pad2d(w, pdims[i], pdims[i + 1]) for i, w in enumerate(weights)]
    b_p = [_pad2d(b, 1, pdims[i + 1]) for i, b in enumerate(biases)]

    kernel = _make_ffn_kernel(num_linears, activation_fct)

    # x/out tiles stream (double-buffered); params have a constant index_map
    # so they are fetched once and stay resident in VMEM across the grid.
    in_specs = [pl.BlockSpec((tile_b, pdims[0]), lambda i: (i, 0))]
    in_specs += [pl.BlockSpec(w.shape, lambda i: (0, 0)) for w in w_p]
    in_specs += [pl.BlockSpec(b.shape, lambda i: (0, 0)) for b in b_p]
    out_specs = pl.BlockSpec((tile_b, pdims[-1]), lambda i: (i, 0))

    # ---- VMEM budget (resident params + double-buffered tiles + f32 chain) ----
    itemsize = x.dtype.itemsize
    param_bytes = sum(int(w.size) * w.dtype.itemsize for w in w_p)
    param_bytes += sum(int(b.size) * b.dtype.itemsize for b in b_p)
    stream_bytes = 2 * tile_b * (pdims[0] + pdims[-1]) * itemsize
    live_bytes = 2 * tile_b * max(pdims) * 4  # live f32 activation chain
    needed = 2 * param_bytes + stream_bytes + live_bytes
    vmem_limit = int(min(max(2 * needed, 32 * 1024 * 1024), 64 * 1024 * 1024))

    # ---- advisory cost estimate for the XLA scheduler ----
    flops = 2 * batch_p * sum(pdims[i] * pdims[i + 1] for i in range(num_linears))
    transcendentals = (batch_p * sum(pdims[1:-1])
                       if activation_fct in ("tanh", "gelu", "silu") else 0)
    bytes_accessed = (int(x_p.size) * itemsize + param_bytes
                      + batch_p * pdims[-1] * itemsize)
    cost = pl.CostEstimate(flops=flops, transcendentals=transcendentals,
                           bytes_accessed=bytes_accessed)

    out_p = pl.pallas_call(
        kernel,
        out_shape=jax.ShapeDtypeStruct((batch_p, pdims[-1]), x.dtype),
        grid=grid,
        in_specs=in_specs,
        out_specs=out_specs,
        compiler_params=pltpu.CompilerParams(
            dimension_semantics=("parallel",),
            vmem_limit_bytes=vmem_limit),
        cost_estimate=cost,
    )(x_p, *w_p, *b_p)

    return out_p[:batch, :out_dim]


def init_params(key, layer_widths):
    """Deterministic params mimicking nn.Linear init: U(-1/sqrt(fan_in), +)."""
    depth = len(layer_widths) - 1
    weights, biases = [], []
    for i in range(depth - 1):
        fan_in, fan_out = layer_widths[i], layer_widths[i + 1]
        key, kw, kb = jax.random.split(key, 3)
        bound = 1.0 / math.sqrt(fan_in)
        # stored pre-transposed: (in, out)
        weights.append(jax.random.uniform(kw, (fan_in, fan_out), jnp.float32,
                                          -bound, bound))
        biases.append(jax.random.uniform(kb, (1, fan_out), jnp.float32,
                                         -bound, bound))
    return weights, biases


def reference_forward(x, weights, biases, activation_fct="tanh"):
    act = _ACTIVATIONS[activation_fct]
    h = x
    n = len(weights)
    for i in range(n):
        h = h @ weights[i] + biases[i]
        if i < n - 1:
            h = act(h)
    return h


if __name__ == "__main__":
    # FeedForwardGeneral(layer_widths=[32, 64, 64, 16], activation_fct='tanh',
    #                    dropout=0.0)  -> Linear(32,64), Tanh, Linear(64,64)
    layer_widths = [32, 64, 64, 16]
    activation_fct = "tanh"

    key = jax.random.PRNGKey(0)
    key, kx = jax.random.split(key)
    weights, biases = init_params(key, layer_widths)

    # Small demo shape (single batch tile).
    x = jax.random.normal(kx, (8, layer_widths[0]), jnp.float32)
    out = jax.block_until_ready(
        feed_forward_general(x, weights, biases, activation_fct))
    ref = reference_forward(x, weights, biases, activation_fct)
    assert out.shape == ref.shape, (out.shape, ref.shape)
    assert jnp.allclose(out, ref, atol=1e-5, rtol=1e-5), "mismatch vs reference"

    # Exercise the multi-tile grid + remainder-batch padding path.
    key, kx2 = jax.random.split(key)
    x2 = jax.random.normal(kx2, (40, layer_widths[0]), jnp.float32)
    out2 = jax.block_until_ready(
        feed_forward_general(x2, weights, biases, activation_fct, tile_b=16))
    ref2 = reference_forward(x2, weights, biases, activation_fct)
    assert out2.shape == ref2.shape, (out2.shape, ref2.shape)
    assert jnp.allclose(out2, ref2, atol=1e-5, rtol=1e-5), "mismatch (tiled)"

    print("KERNEL_OK")
</pallas_src>

<mosaic_0001>
module attributes {stable_mosaic.version = 11 : i64} {
  func.func @kernel(%arg0: i32, %arg1: memref<8x128xf32, #tpu.memory_space<vmem>>, %arg2: memref<128x128xf32, #tpu.memory_space<vmem>>, %arg3: memref<128x128xf32, #tpu.memory_space<vmem>>, %arg4: memref<1x128xf32, #tpu.memory_space<vmem>>, %arg5: memref<1x128xf32, #tpu.memory_space<vmem>>, %arg6: memref<8x128xf32, #tpu.memory_space<vmem>>) attributes {dimension_semantics = [#tpu.dimension_semantics<parallel>], iteration_bounds = array<i64: 1>, scalar_prefetch = 0 : i64, scratch_operands = 0 : i64, tpu.core_type = #tpu.core_type<tc>, window_params = [{transform_indices = @transform_0, window_bounds = array<i64: 8, 128>}, {pipeline_mode = #tpu.pipeline_mode<synchronous>, transform_indices = @transform_1, window_bounds = array<i64: 128, 128>}, {pipeline_mode = #tpu.pipeline_mode<synchronous>, transform_indices = @transform_2, window_bounds = array<i64: 128, 128>}, {pipeline_mode = #tpu.pipeline_mode<synchronous>, transform_indices = @transform_3, window_bounds = array<i64: 1, 128>}, {pipeline_mode = #tpu.pipeline_mode<synchronous>, transform_indices = @transform_4, window_bounds = array<i64: 1, 128>}, {transform_indices = @transform_5, window_bounds = array<i64: 8, 128>}]} {
    %c0 = arith.constant 0 : index
    %c0_0 = arith.constant 0 : index
    %0 = vector.load %arg1[%c0, %c0_0] : memref<8x128xf32, #tpu.memory_space<vmem>>, vector<8x128xf32>
    %c0_1 = arith.constant 0 : index
    %c0_2 = arith.constant 0 : index
    %1 = vector.load %arg2[%c0_1, %c0_2] : memref<128x128xf32, #tpu.memory_space<vmem>>, vector<128x128xf32>
    %cst = arith.constant dense<0.000000e+00> : vector<8x128xf32>
    %2 = tpu.matmul %0, %1, %cst {dimension_numbers = #tpu.dot_dimension_numbers<[1], [0], [0], [1], [0, 0, 1, 1], [], []>} : vector<8x128xf32>, vector<128x128xf32>, vector<8x128xf32> -> vector<8x128xf32>
    %c0_3 = arith.constant 0 : index
    %c0_4 = arith.constant 0 : index
    %3 = vector.load %arg4[%c0_3, %c0_4] : memref<1x128xf32, #tpu.memory_space<vmem>>, vector<1x128xf32>
    %4 = vector.broadcast %3 : vector<1x128xf32> to vector<8x128xf32>
    %5 = arith.addf %2, %4 : vector<8x128xf32>
    %6 = math.tanh %5 : vector<8x128xf32>
    %c0_5 = arith.constant 0 : index
    %c0_6 = arith.constant 0 : index
    %7 = vector.load %arg3[%c0_5, %c0_6] : memref<128x128xf32, #tpu.memory_space<vmem>>, vector<128x128xf32>
    %cst_7 = arith.constant dense<0.000000e+00> : vector<8x128xf32>
    %8 = tpu.matmul %6, %7, %cst_7 {dimension_numbers = #tpu.dot_dimension_numbers<[1], [0], [0], [1], [0, 0, 1, 1], [], []>} : vector<8x128xf32>, vector<128x128xf32>, vector<8x128xf32> -> vector<8x128xf32>
    %c0_8 = arith.constant 0 : index
    %c0_9 = arith.constant 0 : index
    %9 = vector.load %arg5[%c0_8, %c0_9] : memref<1x128xf32, #tpu.memory_space<vmem>>, vector<1x128xf32>
    %10 = vector.broadcast %9 : vector<1x128xf32> to vector<8x128xf32>
    %11 = arith.addf %8, %10 : vector<8x128xf32>
    %c0_10 = arith.constant 0 : index
    %c0_11 = arith.constant 0 : index
    %12 = vector.load %arg6[%c0_10, %c0_11] : memref<8x128xf32, #tpu.memory_space<vmem>>, vector<8x128xf32>
    tpu.vector_store %arg6[%c0_10, %c0_11], %11 {strides = array<i32>} : memref<8x128xf32, #tpu.memory_space<vmem>>, vector<8x128xf32>,
    return
  }
  func.func @transform_0(%arg0: i32) -> (i32, i32) {
    %c0_i32 = arith.constant 0 : i32
    %c0_i32_0 = arith.constant 0 : i32
    return %arg0, %c0_i32 : i32, i32
  }
  func.func @transform_1(%arg0: i32) -> (i32, i32) {
    %c0_i32 = arith.constant 0 : i32
    %c0_i32_0 = arith.constant 0 : i32
    %c0_i32_1 = arith.constant 0 : i32
    return %c0_i32, %c0_i32_0 : i32, i32
  }
  func.func @transform_2(%arg0: i32) -> (i32, i32) {
    %c0_i32 = arith.constant 0 : i32
    %c0_i32_0 = arith.constant 0 : i32
    %c0_i32_1 = arith.constant 0 : i32
    return %c0_i32, %c0_i32_0 : i32, i32
  }
  func.func @transform_3(%arg0: i32) -> (i32, i32) {
    %c0_i32 = arith.constant 0 : i32
    %c0_i32_0 = arith.constant 0 : i32
    %c0_i32_1 = arith.constant 0 : i32
    return %c0_i32, %c0_i32_0 : i32, i32
  }
  func.func @transform_4(%arg0: i32) -> (i32, i32) {
    %c0_i32 = arith.constant 0 : i32
    %c0_i32_0 = arith.constant 0 : i32
    %c0_i32_1 = arith.constant 0 : i32
    return %c0_i32, %c0_i32_0 : i32, i32
  }
  func.func @transform_5(%arg0: i32) -> (i32, i32) {
    %c0_i32 = arith.constant 0 : i32
    %c0_i32_0 = arith.constant 0 : i32
    return %arg0, %c0_i32 : i32, i32
  }
}

</mosaic_0001>

<bundles_post_ra>
// kernel: tpu_custom_call.1
= control target key start
LH: loop header
LB: loop body
LE: loop exit
PB: predicated region body
PF: predicated region fallthrough
CT: control target
= control target key end

     0   :  { %10 = vsyncpa [#allocation3], 0  ;;  %s333_s0 = inlined_call_operand.hbm [shape: f32[8,128], index: 0, kind: input, shape index: {}]   ;;  %s334_s1 = inlined_call_operand.hbm [shape: f32[128,128], index: 1, kind: input, shape index: {}]   ;;  %s335_s2 = inlined_call_operand.hbm [shape: f32[128,128], index: 2, kind: input, shape index: {}]   ;;  %s336_s3 = inlined_call_operand.vmem [shape: f32[1,128], index: 3, kind: input, shape index: {}]   ;;  %s337_s4 = inlined_call_operand.vmem [shape: f32[1,128], index: 4, kind: input, shape index: {}]   ;;  %s338_s5 = inlined_call_operand.hbm [shape: f32[8,128], index: 5, kind: output, shape index: {}]  }
   0x1   :  { %11 = vsyncpa [#allocation6], 0  ;;  %s28_s20 = sshll.u32 %s334_s1, 4  ;;  %s29_s20 = int_to_ptr.hbm [resolvable:$true] %s28_s20 }
   0x2   :  { %12 = vsyncpa [#allocation4], 0  ;;  %s279_s21 = smov [#allocation5]   ;;  %s18_s25 = sshll.u32 %s333_s0, 4  ;;  %s19_s25 = int_to_ptr.hbm [resolvable:$true] %s18_s25 }
   0x3   :  { %s30_s22 = sshll.u32 %s279_s21, 4  ;;  %s280_s26 = smov 128   ;;  %s31_s22 = int_to_ptr.vmem [resolvable:$true] %s30_s22 }
   0x4   :  { %s281_s27 = smov 8   ;;  %s282_s28 = smov [#allocation2]  }
   0x5   :  { %36 = dma.hbm_to_vmem [thread:$0]  %s29_s20, 2048, %s31_s22, [#allocation6], %s280_s26, %s280_s26, %s281_s27  }
   0x6   :  { %s20_s29 = sshll.u32 %s282_s28, 4  ;;  %s41_s7 = sshll.u32 %s335_s2, 4  ;;  %s21_s29 = int_to_ptr.vmem [resolvable:$true] %s20_s29  ;;  %s42_s7 = int_to_ptr.hbm [resolvable:$true] %s41_s7 }
   0x7   :  { %23 = dma.hbm_to_vmem [thread:$0]  %s19_s25, 128, %s21_s29, [#allocation3]  }
   0x8   :  { %s283_s1 = smov [#allocation7]  }
   0x9   :  { %s43_s8 = sshll.u32 %s283_s1, 4  ;;  %s44_s8 = int_to_ptr.vmem [resolvable:$true] %s43_s8 }
   0xa   :  { %49 = dma.hbm_to_vmem [thread:$0]  %s42_s7, 2048, %s44_s8, [#allocation6], %s280_s26, %s280_s26, %s281_s27  }
   0xb   :  { %273 = dma.done.wait [#allocation3], 128  }
   0xc   :  { %274 = vsyncadd [#allocation3], 4294967168 }
   0xd   :  { %275 = dma.done.wait [#allocation6], 4096  }
   0xe   :  { %276 = vsyncadd [#allocation6], 4294963200  ;;  %v82_v0 = vld [vmem:[#allocation5 + $0x78] sm:$0xff]  ;;  %v81_v1 = vld [vmem:[#allocation5 + $0x70] sm:$0xff]  ;;  %s284_s11 = smov [#allocation8]   ;;  %s156_s15 = sshll.u32 %s338_s5, 4  ;;  %s157_s15 = int_to_ptr.hbm [resolvable:$true] %s156_s15 }
   0xf   :  { %87 = vmatpush.msra.mxu0 %v82_v0  ;;  %v80_v2 = vld [vmem:[#allocation5 + $0x68] sm:$0xff]  ;;  %v79_v3 = vld [vmem:[#allocation5 + $0x60] sm:$0xff]  ;;  %v123_v4 = vld [vmem:[#allocation7 + $0x78] sm:$0xff]  ;;  %s154_s12 = sshll.u32 %s284_s11, 4  ;;  %s155_s12 = int_to_ptr.vmem [resolvable:$true] %s154_s12 }
  0x10   :  { %v78_v5 = vld [vmem:[#allocation5 + $0x58] sm:$0xff]  ;;  %128 = vmatpush.msra.mxu1 %v123_v4  ;;  %v122_v6 = vld [vmem:[#allocation7 + $0x70] sm:$0xff]  ;;  %v121_v7 = vld [vmem:[#allocation7 + $0x68] sm:$0xff] }
  0x11   :  { %88 = vmatpush.msra.mxu0 %v81_v1  ;;  %v77_v8 = vld [vmem:[#allocation5 + $0x50] sm:$0xff]  ;;  %v120_v9 = vld [vmem:[#allocation7 + $0x60] sm:$0xff]  ;;  %v76_v10 = vld [vmem:[#allocation5 + $0x48] sm:$0xff] }
  0x12   :  { %129 = vmatpush.msra.mxu1 %v122_v6  ;;  %v119_v11 = vld [vmem:[#allocation7 + $0x58] sm:$0xff]  ;;  %v75_v12 = vld [vmem:[#allocation5 + $0x40] sm:$0xff]  ;;  %v118_v13 = vld [vmem:[#allocation7 + $0x50] sm:$0xff] }
  0x13   :  { %89 = vmatpush.msra.mxu0 %v80_v2  ;;  %v74_v14 = vld [vmem:[#allocation5 + $0x38] sm:$0xff]  ;;  %v117_v15 = vld [vmem:[#allocation7 + $0x48] sm:$0xff]  ;;  %v73_v16 = vld [vmem:[#allocation5 + $0x30] sm:$0xff] }
  0x14   :  { %130 = vmatpush.msra.mxu1 %v121_v7  ;;  %v116_v17 = vld [vmem:[#allocation7 + $0x40] sm:$0xff]  ;;  %v72_v18 = vld [vmem:[#allocation5 + $0x28] sm:$0xff]  ;;  %v115_v19 = vld [vmem:[#allocation7 + $0x38] sm:$0xff] }
  0x15   :  { %90 = vmatpush.msra.mxu0 %v79_v3  ;;  %v71_v20 = vld [vmem:[#allocation5 + $0x20] sm:$0xff]  ;;  %v114_v21 = vld [vmem:[#allocation7 + $0x30] sm:$0xff]  ;;  %v70_v22 = vld [vmem:[#allocation5 + $0x18] sm:$0xff] }
  0x16   :  { %131 = vmatpush.msra.mxu1 %v120_v9  ;;  %v113_v23 = vld [vmem:[#allocation7 + $0x28] sm:$0xff]  ;;  %v69_v24 = vld [vmem:[#allocation5 + $0x10] sm:$0xff]  ;;  %v67_v26 = vld [vmem:[#allocation5] sm:$0xff] }
  0x17   :  { %91 = vmatpush.msra.mxu0 %v78_v5  ;;  %v68_v25 = vld [vmem:[#allocation5 + $0x8] sm:$0xff]  ;;  %v66_v27 = vld [vmem:[#allocation2] sm:$0xff]  ;;  %v112_v28 = vld [vmem:[#allocation7 + $0x20] sm:$0xff] }
  0x18   :  { %132 = vmatpush.msra.mxu1 %v119_v11  ;;  %v111_v29 = vld [vmem:[#allocation7 + $0x18] sm:$0xff]  ;;  %v110_v30 = vld [vmem:[#allocation7 + $0x10] sm:$0xff]  ;;  %v109_v31 = vld [vmem:[#allocation7 + $0x8] sm:$0xff] }
  0x19   :  { %92 = vmatpush.msra.mxu0 %v77_v8  ;;  %v108_v32 = vld [vmem:[#allocation7] sm:$0xff]  ;;  %v173_v33 = vld [vmem:[%s336_s3] ss:$0 sm:$0xff] }
  0x1a   :  { %133 = vmatpush.msra.mxu1 %v118_v13  ;;  %v174_v37 = vld [vmem:[%s337_s4] ss:$0 sm:$0xff] }
  0x1b   :  { %93 = vmatpush.msra.mxu0 %v76_v10 }
  0x1c   :  { %134 = vmatpush.msra.mxu1 %v117_v15 }
  0x1d   :  { %94 = vmatpush.msra.mxu0 %v75_v12 }
  0x1e   :  { %135 = vmatpush.msra.mxu1 %v116_v17 }
  0x1f   :  { %95 = vmatpush.msra.mxu0 %v74_v14 }
  0x20   :  { %136 = vmatpush.msra.mxu1 %v115_v19 }
  0x21   :  { %96 = vmatpush.msra.mxu0 %v73_v16 }
  0x22   :  { %137 = vmatpush.msra.mxu1 %v114_v21 }
  0x23   :  { %97 = vmatpush.msra.mxu0 %v72_v18 }
  0x24   :  { %138 = vmatpush.msra.mxu1 %v113_v23 }
  0x25   :  { %98 = vmatpush.msra.mxu0 %v71_v20 }
  0x26   :  { %139 = vmatpush.msra.mxu1 %v112_v28 }
  0x27   :  { %99 = vmatpush.msra.mxu0 %v70_v22 }
  0x28   :  { %140 = vmatpush.msra.mxu1 %v111_v29 }
  0x29   :  { %100 = vmatpush.msra.mxu0 %v69_v24 }
  0x2a   :  { %141 = vmatpush.msra.mxu1 %v110_v30 }
  0x2b   :  { %101 = vmatpush.msra.mxu0 %v68_v25 }
  0x2c   :  { %142 = vmatpush.msra.mxu1 %v109_v31 }
  0x2d   :  { %102 = vmatpush.msra.mxu0 %v67_v26 }
  0x2e   :  { %103 = vmatmul.f32.vlgmr.msra.gmra.mxu0 %v66_v27  ;;  %143 = vmatpush.msra.mxu1 %v108_v32 }
  0xab   :  { %v104_v34 = vpop.f32.mrf.mxu0 }
  0xac   :  { %v105_v35 = vadd.f32 %v173_v33, %v104_v34 }
  0xae   :  { %175 = vtanh.f32 %v105_v35 }
  0xb4   :  { %v176_v36 = vpop.eup %175 }
  0xb5   :  { %144 = vmatmul.f32.vlgmr.msra.gmra.mxu1 %v176_v36 }
 0x132   :  { %v145_v38 = vpop.f32.mrf.mxu1 }
 0x133   :  { %v146_v39 = vadd.f32 %v174_v37, %v145_v38 }
 0x135   :  { %148 = vst [vmem:[#allocation8] sm:$0xff] %v146_v39 }
 0x136   :  { %159 = dma.vmem_to_hbm [thread:$0]  %s155_s12, 128, %s157_s15, [#allocation4]  }
 0x137   :  { %277 = dma.done.wait [#allocation4], 128  }
 0x138   :  { %278 = vsyncadd [#allocation4], 4294967168 }
 0x139   :  { %164 = vsyncpa [#allocation3], 1 }
 0x13a   :  { %165 = vsyncpa [#allocation6], 1 }
 0x13b   :  { %166 = vsyncpa [#allocation4], 1 }

</bundles_post_ra>
